<compile_context>
chip_gen: v6e
topology: v6e:2x2x1
jax: 0.10.0
libtpu: 0.0.40
codegen_flags: <defaults>
</compile_context>

<pallas_src>
import functools

import jax
import jax.numpy as jnp
from jax import lax
from jax.experimental import pallas as pl
from jax.experimental.pallas import tpu as pltpu


def _squash(s, eps=1e-8):
    # Standard capsule "squash" along the last dim:
    #   squash(s) = (||s||^2 / (1 + ||s||^2)) * s / ||s||
    # TODO(synk): `squash` is referenced but not defined in the source file;
    # this is the canonical capsule-network squash.
    sq_norm = jnp.sum(s * s, axis=-1, keepdims=True)
    return (sq_norm / (1.0 + sq_norm)) * s * lax.rsqrt(sq_norm + eps)


def _routing_kernel(x_ref, wt_ref, pool_ref, poolt_ref, out_ref, *,
                    H, iter_routing):
    # Shapes (per grid step / batch tile):
    #   x_ref    : (R, H+1)  R = B_tile*C*K, last column is all-ones
    #   wt_ref   : (H+1, H+1) = blockdiag(W.T, 1)
    #   pool_ref : (G, R)   bf16 0/1 segment-sum matrix, G = B_tile*C
    #   poolt_ref: (R, G)   bf16 transpose of pool (group broadcast)
    #   out_ref  : (G, H)
    x_aug = x_ref[...]                      # (R, H+1) f32
    wt_aug = wt_ref[...]                    # (H+1, H+1) f32
    pool = pool_ref[...]                    # (G, R) bf16
    pool_t = poolt_ref[...]                 # (R, G) bf16

    # Loop-invariant projection (kept in f32): hat_aug = [x @ W.T | 1].
    hat_aug = jnp.dot(x_aug, wt_aug, preferred_element_type=jnp.float32)
    hat = hat_aug[:, :H]                    # (R, H)

    R = x_aug.shape[0]
    G = pool.shape[0]
    b = jnp.zeros((R, 1), jnp.float32)      # routing logits, flat layout
    c = jnp.zeros((G, H), jnp.float32)
    for it in range(iter_routing):
        # Softmax numerator.  No max-shift: b starts at 0 and each agreement
        # update is bounded by ||hat||*||c|| (||c|| < 1 after squash), so exp
        # cannot overflow in f32 over <= iter_routing updates.  This removes
        # a serial XLU reduction from every iteration.
        e = jnp.exp(b)                                                   # (R,1)

        # Fused pooling matmul: cols :H give sum_k d~*hat, col H gives sum_k d~
        # (the softmax denominator) because hat_aug's last column is ones.
        z = (hat_aug * e).astype(jnp.bfloat16)                           # (R,H+1)
        fused = jnp.dot(pool, z, preferred_element_type=jnp.float32)     # (G,H+1)
        num = fused[:, :H]                                               # (G,H)
        den = fused[:, H:]                                               # (G,1)
        inv_den = pl.reciprocal(den + 1e-30, approx=True)                # EUP
        c_hat = num * inv_den
        c = _squash(c_hat)                                               # (G,H)

        # Agreement update b += <hat, c_group>; dead on the last iteration.
        if it < iter_routing - 1:
            c_exp = jnp.dot(pool_t, c.astype(jnp.bfloat16),
                            preferred_element_type=jnp.float32)          # (R,H)
            b = b + jnp.sum(hat * c_exp, axis=-1, keepdims=True)         # (R,1)

    out_ref[...] = c


def dynamic_routing_batched(encoder_output, weight, iter_routing=3,
                            b_tile=None):
    """B independent DynamicRouting problems in one pallas_call.

    encoder_output: (B, C, K, H), weight: (H, H).  Returns (B, C, H).
    """
    B, C, K, H = encoder_output.shape
    if b_tile is None:
        # Largest divisor of B keeping <= ~2K capsule rows per block and an
        # 8-aligned output sublane count (unless the block covers all of B).
        b_tile = B
        for cand in range(B, 0, -1):
            if B % cand == 0 and cand * C * K <= 2048 and (
                    cand == B or (cand * C) % 8 == 0):
                b_tile = cand
                break
    assert B % b_tile == 0
    assert b_tile == B or (b_tile * C) % 8 == 0, "output block needs 8-aligned rows"

    R_blk = b_tile * C * K          # capsule rows per block
    G_blk = b_tile * C              # groups per block

    # ---- One-time layout prep in XLA (outside the hot kernel) ----
    # Flat capsule layout + ones column (threads the softmax denominator
    # through the same pooling matmul as the numerator).
    x_flat = encoder_output.reshape(B * C * K, H).astype(jnp.float32)
    x_aug = jnp.concatenate(
        [x_flat, jnp.ones((B * C * K, 1), jnp.float32)], axis=1)        # (B*CK, H+1)
    # Pre-transposed weight, extended so the ones column passes through.
    wt_aug = (jnp.zeros((H + 1, H + 1), jnp.float32)
              .at[:H, :H].set(jnp.transpose(weight).astype(jnp.float32))
              .at[H, H].set(1.0))
    # Block-diagonal segment-sum matrices over (batch-in-tile, group); 0/1 so
    # exactly representable in bf16 (native MXU dtype on all generations).
    g_idx = jnp.arange(G_blk)[:, None]
    j_idx = jnp.arange(R_blk)[None, :]
    pool = (j_idx // K == g_idx).astype(jnp.bfloat16)                   # (G_blk, R_blk)
    pool_t = jnp.transpose(pool)                                        # (R_blk, G_blk)

    kernel = functools.partial(_routing_kernel, H=H, iter_routing=iter_routing)
    out = pl.pallas_call(
        kernel,
        out_shape=jax.ShapeDtypeStruct((B * C, H), jnp.float32),
        grid=(B // b_tile,),
        in_specs=[
            pl.BlockSpec((R_blk, H + 1), lambda i: (i, 0)),
            pl.BlockSpec((H + 1, H + 1), lambda i: (0, 0)),
            pl.BlockSpec((G_blk, R_blk), lambda i: (0, 0)),
            pl.BlockSpec((R_blk, G_blk), lambda i: (0, 0)),
        ],
        out_specs=pl.BlockSpec((G_blk, H), lambda i: (i, 0)),
        compiler_params=pltpu.CompilerParams(
            dimension_semantics=("parallel",)),   # batch tiles -> both TCs on v7x
    )(x_aug, wt_aug, pool, pool_t)
    return out.reshape(B, C, H)


def dynamic_routing(encoder_output, weight, iter_routing=3):
    """Single routing problem — matches the PyTorch module's forward."""
    out = dynamic_routing_batched(encoder_output[None], weight,
                                  iter_routing=iter_routing, b_tile=1)
    return out[0]


def dynamic_routing_ref(encoder_output, weight, iter_routing=3):
    """Pure-JAX reference mirroring the PyTorch forward."""
    C, K, H = encoder_output.shape
    b = jnp.zeros((C, K), jnp.float32)
    hat = jnp.einsum("ckh,dh->ckd", encoder_output, weight)
    c = None
    for _ in range(iter_routing):
        d = jax.nn.softmax(b, axis=-1)
        c_hat = jnp.sum(hat * d[..., None], axis=1)
        c = _squash(c_hat)
        b = b + jnp.einsum("ckh,ch->ck", hat, c)
    return c


if __name__ == "__main__":
    C, K, H = 4, 8, 32      # (num groups, capsules per group, hidden_size)
    B = 8                   # independent routing problems for the batched path

    key = jax.random.PRNGKey(0)
    kx, kw = jax.random.split(key)
    x = jax.random.normal(kx, (B, C, K, H), dtype=jnp.float32)
    # nn.Linear(H, H, bias=False) default init: U(-1/sqrt(H), 1/sqrt(H))
    bound = 1.0 / (H ** 0.5)
    w = jax.random.uniform(kw, (H, H), dtype=jnp.float32,
                           minval=-bound, maxval=bound)

    # Tolerance sized for the bf16 pooling-matmul operands and the EUP
    # approximate reciprocal; observed error is typically well below this.
    atol = rtol = 3e-2

    # 1) Single-problem forward (the module spec: forward((C, K, H))).
    out1 = jax.block_until_ready(dynamic_routing(x[0], w, iter_routing=3))
    ref1 = dynamic_routing_ref(x[0], w, iter_routing=3)
    assert out1.shape == (C, H)
    assert jnp.allclose(out1, ref1, atol=atol, rtol=rtol), (
        f"single: max abs err {jnp.max(jnp.abs(out1 - ref1))}")

    # 2) Batched: B problems in one pallas_call, parallel grid over batch tiles.
    outB = jax.block_until_ready(
        dynamic_routing_batched(x, w, iter_routing=3, b_tile=4))
    refB = jnp.stack([dynamic_routing_ref(x[i], w, iter_routing=3)
                      for i in range(B)])
    assert outB.shape == (B, C, H)
    assert jnp.allclose(outB, refB, atol=atol, rtol=rtol), (
        f"batched: max abs err {jnp.max(jnp.abs(outB - refB))}")

    print("KERNEL_OK")
</pallas_src>

<mosaic_0001>
module attributes {stable_mosaic.version = 11 : i64} {
  func.func @_routing_kernel(%arg0: i32, %arg1: memref<32x33xf32, #tpu.memory_space<vmem>>, %arg2: memref<33x33xf32, #tpu.memory_space<vmem>>, %arg3: memref<4x32xbf16, #tpu.memory_space<vmem>>, %arg4: memref<32x4xbf16, #tpu.memory_space<vmem>>, %arg5: memref<4x32xf32, #tpu.memory_space<vmem>>) attributes {dimension_semantics = [#tpu.dimension_semantics<parallel>], iteration_bounds = array<i64: 1>, scalar_prefetch = 0 : i64, scratch_operands = 0 : i64, tpu.core_type = #tpu.core_type<tc>, window_params = [{transform_indices = @transform_0, window_bounds = array<i64: 32, 33>}, {pipeline_mode = #tpu.pipeline_mode<synchronous>, transform_indices = @transform_1, window_bounds = array<i64: 33, 33>}, {pipeline_mode = #tpu.pipeline_mode<synchronous>, transform_indices = @transform_2, window_bounds = array<i64: 4, 32>}, {pipeline_mode = #tpu.pipeline_mode<synchronous>, transform_indices = @transform_3, window_bounds = array<i64: 32, 4>}, {transform_indices = @transform_4, window_bounds = array<i64: 4, 32>}]} {
    %c0 = arith.constant 0 : index
    %c0_0 = arith.constant 0 : index
    %0 = vector.load %arg1[%c0, %c0_0] : memref<32x33xf32, #tpu.memory_space<vmem>>, vector<32x33xf32>
    %c0_1 = arith.constant 0 : index
    %c0_2 = arith.constant 0 : index
    %1 = vector.load %arg2[%c0_1, %c0_2] : memref<33x33xf32, #tpu.memory_space<vmem>>, vector<33x33xf32>
    %c0_3 = arith.constant 0 : index
    %c0_4 = arith.constant 0 : index
    %2 = vector.load %arg3[%c0_3, %c0_4] : memref<4x32xbf16, #tpu.memory_space<vmem>>, vector<4x32xbf16>
    %c0_5 = arith.constant 0 : index
    %c0_6 = arith.constant 0 : index
    %3 = vector.load %arg4[%c0_5, %c0_6] : memref<32x4xbf16, #tpu.memory_space<vmem>>, vector<32x4xbf16>
    %cst = arith.constant dense<0.000000e+00> : vector<32x33xf32>
    %4 = tpu.matmul %0, %1, %cst {dimension_numbers = #tpu.dot_dimension_numbers<[1], [0], [0], [1], [0, 0, 1, 1], [], []>} : vector<32x33xf32>, vector<33x33xf32>, vector<32x33xf32> -> vector<32x33xf32>
    %5 = vector.extract_strided_slice %4 {offsets = [0, 0], sizes = [32, 32], strides = [1, 1]} : vector<32x33xf32> to vector<32x32xf32>
    %cst_7 = arith.constant 0.000000e+00 : f32
    %6 = vector.broadcast %cst_7 : f32 to vector<32x1xf32>
    %7 = math.exp %6 : vector<32x1xf32>
    %8 = vector.broadcast %7 : vector<32x1xf32> to vector<32x33xf32>
    %9 = arith.mulf %4, %8 : vector<32x33xf32>
    %10 = arith.truncf %9 : vector<32x33xf32> to vector<32x33xbf16>
    %cst_8 = arith.constant dense<0.000000e+00> : vector<4x33xf32>
    %11 = tpu.matmul %2, %10, %cst_8 {dimension_numbers = #tpu.dot_dimension_numbers<[1], [0], [0], [1], [0, 0, 1, 1], [], []>} : vector<4x32xbf16>, vector<32x33xbf16>, vector<4x33xf32> -> vector<4x33xf32>
    %12 = vector.extract_strided_slice %11 {offsets = [0, 0], sizes = [4, 32], strides = [1, 1]} : vector<4x33xf32> to vector<4x32xf32>
    %13 = vector.extract_strided_slice %11 {offsets = [0, 32], sizes = [4, 1], strides = [1, 1]} : vector<4x33xf32> to vector<4x1xf32>
    %cst_9 = arith.constant 1.000000e-30 : f32
    %14 = vector.broadcast %cst_9 : f32 to vector<4x1xf32>
    %15 = arith.addf %13, %14 : vector<4x1xf32>
    %16 = tpu.reciprocal %15 {approx = true} : vector<4x1xf32> -> vector<4x1xf32>
    %17 = vector.broadcast %16 : vector<4x1xf32> to vector<4x32xf32>
    %18 = arith.mulf %12, %17 : vector<4x32xf32>
    %19 = arith.mulf %18, %18 : vector<4x32xf32>
    %cst_10 = arith.constant dense<0.000000e+00> : vector<4xf32>
    %20 = vector.multi_reduction <add>, %19, %cst_10 [1] : vector<4x32xf32> to vector<4xf32>
    %21 = vector.shape_cast %20 : vector<4xf32> to vector<4x1xf32>
    %cst_11 = arith.constant 1.000000e+00 : f32
    %22 = vector.broadcast %cst_11 : f32 to vector<4x1xf32>
    %23 = arith.addf %22, %21 : vector<4x1xf32>
    %24 = arith.divf %21, %23 : vector<4x1xf32>
    %25 = vector.broadcast %24 : vector<4x1xf32> to vector<4x32xf32>
    %26 = arith.mulf %25, %18 : vector<4x32xf32>
    %cst_12 = arith.constant 9.99999993E-9 : f32
    %27 = vector.broadcast %cst_12 : f32 to vector<4x1xf32>
    %28 = arith.addf %21, %27 : vector<4x1xf32>
    %29 = math.rsqrt %28 : vector<4x1xf32>
    %30 = vector.broadcast %29 : vector<4x1xf32> to vector<4x32xf32>
    %31 = arith.mulf %26, %30 : vector<4x32xf32>
    %32 = arith.truncf %31 : vector<4x32xf32> to vector<4x32xbf16>
    %cst_13 = arith.constant dense<0.000000e+00> : vector<32x32xf32>
    %33 = tpu.matmul %3, %32, %cst_13 {dimension_numbers = #tpu.dot_dimension_numbers<[1], [0], [0], [1], [0, 0, 1, 1], [], []>} : vector<32x4xbf16>, vector<4x32xbf16>, vector<32x32xf32> -> vector<32x32xf32>
    %34 = arith.mulf %5, %33 : vector<32x32xf32>
    %cst_14 = arith.constant dense<0.000000e+00> : vector<32xf32>
    %35 = vector.multi_reduction <add>, %34, %cst_14 [1] : vector<32x32xf32> to vector<32xf32>
    %36 = vector.shape_cast %35 : vector<32xf32> to vector<32x1xf32>
    %37 = arith.addf %6, %36 : vector<32x1xf32>
    %38 = math.exp %37 : vector<32x1xf32>
    %39 = vector.broadcast %38 : vector<32x1xf32> to vector<32x33xf32>
    %40 = arith.mulf %4, %39 : vector<32x33xf32>
    %41 = arith.truncf %40 : vector<32x33xf32> to vector<32x33xbf16>
    %cst_15 = arith.constant dense<0.000000e+00> : vector<4x33xf32>
    %42 = tpu.matmul %2, %41, %cst_15 {dimension_numbers = #tpu.dot_dimension_numbers<[1], [0], [0], [1], [0, 0, 1, 1], [], []>} : vector<4x32xbf16>, vector<32x33xbf16>, vector<4x33xf32> -> vector<4x33xf32>
    %43 = vector.extract_strided_slice %42 {offsets = [0, 0], sizes = [4, 32], strides = [1, 1]} : vector<4x33xf32> to vector<4x32xf32>
    %44 = vector.extract_strided_slice %42 {offsets = [0, 32], sizes = [4, 1], strides = [1, 1]} : vector<4x33xf32> to vector<4x1xf32>
    %cst_16 = arith.constant 1.000000e-30 : f32
    %45 = vector.broadcast %cst_16 : f32 to vector<4x1xf32>
    %46 = arith.addf %44, %45 : vector<4x1xf32>
    %47 = tpu.reciprocal %46 {approx = true} : vector<4x1xf32> -> vector<4x1xf32>
    %48 = vector.broadcast %47 : vector<4x1xf32> to vector<4x32xf32>
    %49 = arith.mulf %43, %48 : vector<4x32xf32>
    %50 = arith.mulf %49, %49 : vector<4x32xf32>
    %cst_17 = arith.constant dense<0.000000e+00> : vector<4xf32>
    %51 = vector.multi_reduction <add>, %50, %cst_17 [1] : vector<4x32xf32> to vector<4xf32>
    %52 = vector.shape_cast %51 : vector<4xf32> to vector<4x1xf32>
    %cst_18 = arith.constant 1.000000e+00 : f32
    %53 = vector.broadcast %cst_18 : f32 to vector<4x1xf32>
    %54 = arith.addf %53, %52 : vector<4x1xf32>
    %55 = arith.divf %52, %54 : vector<4x1xf32>
    %56 = vector.broadcast %55 : vector<4x1xf32> to vector<4x32xf32>
    %57 = arith.mulf %56, %49 : vector<4x32xf32>
    %cst_19 = arith.constant 9.99999993E-9 : f32
    %58 = vector.broadcast %cst_19 : f32 to vector<4x1xf32>
    %59 = arith.addf %52, %58 : vector<4x1xf32>
    %60 = math.rsqrt %59 : vector<4x1xf32>
    %61 = vector.broadcast %60 : vector<4x1xf32> to vector<4x32xf32>
    %62 = arith.mulf %57, %61 : vector<4x32xf32>
    %63 = arith.truncf %62 : vector<4x32xf32> to vector<4x32xbf16>
    %cst_20 = arith.constant dense<0.000000e+00> : vector<32x32xf32>
    %64 = tpu.matmul %3, %63, %cst_20 {dimension_numbers = #tpu.dot_dimension_numbers<[1], [0], [0], [1], [0, 0, 1, 1], [], []>} : vector<32x4xbf16>, vector<4x32xbf16>, vector<32x32xf32> -> vector<32x32xf32>
    %65 = arith.mulf %5, %64 : vector<32x32xf32>
    %cst_21 = arith.constant dense<0.000000e+00> : vector<32xf32>
    %66 = vector.multi_reduction <add>, %65, %cst_21 [1] : vector<32x32xf32> to vector<32xf32>
    %67 = vector.shape_cast %66 : vector<32xf32> to vector<32x1xf32>
    %68 = arith.addf %37, %67 : vector<32x1xf32>
    %69 = math.exp %68 : vector<32x1xf32>
    %70 = vector.broadcast %69 : vector<32x1xf32> to vector<32x33xf32>
    %71 = arith.mulf %4, %70 : vector<32x33xf32>
    %72 = arith.truncf %71 : vector<32x33xf32> to vector<32x33xbf16>
    %cst_22 = arith.constant dense<0.000000e+00> : vector<4x33xf32>
    %73 = tpu.matmul %2, %72, %cst_22 {dimension_numbers = #tpu.dot_dimension_numbers<[1], [0], [0], [1], [0, 0, 1, 1], [], []>} : vector<4x32xbf16>, vector<32x33xbf16>, vector<4x33xf32> -> vector<4x33xf32>
    %74 = vector.extract_strided_slice %73 {offsets = [0, 0], sizes = [4, 32], strides = [1, 1]} : vector<4x33xf32> to vector<4x32xf32>
    %75 = vector.extract_strided_slice %73 {offsets = [0, 32], sizes = [4, 1], strides = [1, 1]} : vector<4x33xf32> to vector<4x1xf32>
    %cst_23 = arith.constant 1.000000e-30 : f32
    %76 = vector.broadcast %cst_23 : f32 to vector<4x1xf32>
    %77 = arith.addf %75, %76 : vector<4x1xf32>
    %78 = tpu.reciprocal %77 {approx = true} : vector<4x1xf32> -> vector<4x1xf32>
    %79 = vector.broadcast %78 : vector<4x1xf32> to vector<4x32xf32>
    %80 = arith.mulf %74, %79 : vector<4x32xf32>
    %81 = arith.mulf %80, %80 : vector<4x32xf32>
    %cst_24 = arith.constant dense<0.000000e+00> : vector<4xf32>
    %82 = vector.multi_reduction <add>, %81, %cst_24 [1] : vector<4x32xf32> to vector<4xf32>
    %83 = vector.shape_cast %82 : vector<4xf32> to vector<4x1xf32>
    %cst_25 = arith.constant 1.000000e+00 : f32
    %84 = vector.broadcast %cst_25 : f32 to vector<4x1xf32>
    %85 = arith.addf %84, %83 : vector<4x1xf32>
    %86 = arith.divf %83, %85 : vector<4x1xf32>
    %87 = vector.broadcast %86 : vector<4x1xf32> to vector<4x32xf32>
    %88 = arith.mulf %87, %80 : vector<4x32xf32>
    %cst_26 = arith.constant 9.99999993E-9 : f32
    %89 = vector.broadcast %cst_26 : f32 to vector<4x1xf32>
    %90 = arith.addf %83, %89 : vector<4x1xf32>
    %91 = math.rsqrt %90 : vector<4x1xf32>
    %92 = vector.broadcast %91 : vector<4x1xf32> to vector<4x32xf32>
    %93 = arith.mulf %88, %92 : vector<4x32xf32>
    %c0_27 = arith.constant 0 : index
    %c0_28 = arith.constant 0 : index
    %94 = vector.load %arg5[%c0_27, %c0_28] : memref<4x32xf32, #tpu.memory_space<vmem>>, vector<4x32xf32>
    tpu.vector_store %arg5[%c0_27, %c0_28], %93 {strides = array<i32>} : memref<4x32xf32, #tpu.memory_space<vmem>>, vector<4x32xf32>,
    return
  }
  func.func @transform_0(%arg0: i32) -> (i32, i32) {
    %c0_i32 = arith.constant 0 : i32
    %c0_i32_0 = arith.constant 0 : i32
    return %arg0, %c0_i32 : i32, i32
  }
  func.func @transform_1(%arg0: i32) -> (i32, i32) {
    %c0_i32 = arith.constant 0 : i32
    %c0_i32_0 = arith.constant 0 : i32
    %c0_i32_1 = arith.constant 0 : i32
    return %c0_i32, %c0_i32_0 : i32, i32
  }
  func.func @transform_2(%arg0: i32) -> (i32, i32) {
    %c0_i32 = arith.constant 0 : i32
    %c0_i32_0 = arith.constant 0 : i32
    %c0_i32_1 = arith.constant 0 : i32
    return %c0_i32, %c0_i32_0 : i32, i32
  }
  func.func @transform_3(%arg0: i32) -> (i32, i32) {
    %c0_i32 = arith.constant 0 : i32
    %c0_i32_0 = arith.constant 0 : i32
    %c0_i32_1 = arith.constant 0 : i32
    return %c0_i32, %c0_i32_0 : i32, i32
  }
  func.func @transform_4(%arg0: i32) -> (i32, i32) {
    %c0_i32 = arith.constant 0 : i32
    %c0_i32_0 = arith.constant 0 : i32
    return %arg0, %c0_i32 : i32, i32
  }
}

</mosaic_0001>

<bundles_post_ra>
// kernel: tpu_custom_call.1
= control target key start
LH: loop header
LB: loop body
LE: loop exit
PB: predicated region body
PF: predicated region fallthrough
CT: control target
= control target key end

     0   :  { %9 = vsyncpa [#allocation3], 0  ;;  %s903_s0 = inlined_call_operand.hbm [shape: f32[32,33], index: 0, kind: input, shape index: {}]   ;;  %s904_s1 = inlined_call_operand.hbm [shape: f32[33,33], index: 1, kind: input, shape index: {}]   ;;  %s905_s2 = inlined_call_operand.vmem [shape: bf16[4,32], index: 2, kind: input, shape index: {}]   ;;  %s906_s3 = inlined_call_operand.vmem [shape: bf16[32,4], index: 3, kind: input, shape index: {}]   ;;  %s907_s4 = inlined_call_operand.hbm [shape: f32[4,32], index: 4, kind: output, shape index: {}]  }
   0x1   :  { %10 = vsyncpa [#allocation6], 0 }
   0x2   :  { %11 = vsyncpa [#allocation4], 0  ;;  %s760_s15 = smov [#allocation2]  }
   0x3   :  { %s17_s16 = sshll.u32 %s760_s15, 4  ;;  %s18_s16 = int_to_ptr.vmem [resolvable:$true] %s17_s16 }
   0x4   :  { %s702_s17 = scalar_lea.vmem %s18_s16, 512  ;;  %p707_p1 = scmp.lt.s32.totalorder %s18_s16, %s18_s16 }
   0x5   :  { %p703_p0 = scmp.ne.s32.totalorder %s18_s16, %s702_s17  ;;  %p708_p2 = scmp.lt.s32.totalorder %s702_s17, %s702_s17 }
   0x7   :  { %p709_p3 = por %p708_p2, %p707_p1 }
   0x9   :  { %p710_p4 = pnand %p709_p3, %p703_p0 }
   0xb   :  { %713 = shalt.err (!%p710_p4)
}
   0xc   :  { %s761_s18 = smov 128   ;;  %s762_s19 = smov 8  }
   0xd   :  { %23 = dma.hbm_to_vmem [thread:$0]  %s903_s0, 512, %s18_s16, [#allocation3], %s761_s18, %s761_s18, %s762_s19  }
   0xe   :  { %s763_s22 = smov [#allocation5]  }
   0xf   :  { %s29_s23 = sshll.u32 %s763_s22, 4  ;;  %s30_s23 = int_to_ptr.vmem [resolvable:$true] %s29_s23 }
  0x10   :  { %s722_s24 = scalar_lea.vmem %s30_s23, 640  ;;  %p727_p6 = scmp.lt.s32.totalorder %s30_s23, %s30_s23 }
  0x11   :  { %p723_p5 = scmp.ne.s32.totalorder %s30_s23, %s722_s24  ;;  %p728_p7 = scmp.lt.s32.totalorder %s722_s24, %s722_s24 }
  0x13   :  { %p729_p8 = por %p728_p7, %p727_p6 }
  0x15   :  { %p730_p9 = pnand %p729_p8, %p723_p5 }
  0x17   :  { %733 = shalt.err (!%p730_p9)
}
  0x18   :  { %35 = dma.hbm_to_vmem [thread:$0]  %s904_s1, 640, %s30_s23, [#allocation6], %s761_s18, %s761_s18, %s762_s19  }
  0x19   :  { %754 = dma.done.wait [#allocation3], 512  }
  0x1a   :  { %755 = vsyncadd [#allocation3], 4294966784 }
  0x1b   :  { %756 = dma.done.wait [#allocation6], 640  }
  0x1c   :  { %757 = vsyncadd [#allocation6], 4294966656  ;;  %vm74_vm0 = vcmask 1040384   ;;  %vm61_vm1 = vcmask 269312   ;;  %v55_v0 = vld [vmem:[#allocation5 + $0x20] sm:$0x1] }
  0x1d   :  { %v54_v1 = vld [vmem:[#allocation5 + $0x18] sm:$0xff]  ;;  %594 = vmatprep.subr.msk.mxu0 %vm74_vm0, %v55_v0  ;;  %v47_v2 = vld [vmem:[#allocation2] sm:$0xff]  ;;  %v53_v3 = vld [vmem:[#allocation5 + $0x10] sm:$0xff]  ;;  %v764_v9 = vmov 0.0   ;;  %vm765_vm2 = vmmov 0   ;;  %vm165_vm3 = vcmask 261120  }
  0x1e   :  { %595 = vmatpush3.msk.msra.mxu0 %vm74_vm0, %v55_v0  ;;  %604 = vmatprep.mubr.msk.f32.mxu0 %vm61_vm1, %v47_v2  ;;  %v52_v4 = vld [vmem:[#allocation5 + $0x8] sm:$0xff]  ;;  %v51_v5 = vld [vmem:[#allocation5] sm:$0xff]  ;;  %v49_v7 = vld [vmem:[#allocation2 + $0x10] sm:$0xff]  ;;  %v766_v17 = vmov 32   ;;  %vm218_vm4 = vcmask 257024   ;;  %vm240_vm5 = vcmask 31744  }
  0x1f   :  { %596 = vmatprep.subr.mxu0 %v54_v1  ;;  %v48_v6 = vld [vmem:[#allocation2 + $0x8] sm:$0xff]  ;;  %v50_v8 = vld [vmem:[#allocation2 + $0x18] sm:$0xff]  ;;  %610 = vmatprep.subr.bf16.mxu1 %v764_v9  ;;  %v825_v16 = vld [vmem:[%s905_s2] sm:$0x3]  ;;  %vm247_vm6 = vcmask 1041408  }
  0x20   :  { %597 = vmatpush3.msra.mxu0 %v54_v1  ;;  %614 = vmatprep.mubr.msk.bf16.mxu1 %vm765_vm2, %v764_v9  ;;  %v658_v28 = vld [vmem:[%s906_s3] sm:$0xff]   ;;  %v839_v39 = vld [vmem:[%s906_s3 + $0x8] sm:$0xff]   ;;  %s767_s3 = smov [#allocation7]  }
  0x21   :  { %598 = vmatprep.subr.mxu0 %v53_v3  ;;  %656 = vset.pattern.permute.xlu0 %v766_v17  ;;  %s546_s30 = sshll.u32 %s767_s3, 4  ;;  %s547_s30 = int_to_ptr.vmem [resolvable:$true] %s546_s30 }
  0x22   :  { %599 = vmatpush3.msra.mxu0 %v53_v3  ;;  %657 = vset.pattern.permute.xlu1 %v766_v17  ;;  %s734_s5 = scalar_lea.vmem %s547_s30, 64  ;;  %p739_p11 = scmp.lt.s32.totalorder %s547_s30, %s547_s30 }
  0x23   :  { %600 = vmatprep.subr.mxu0 %v52_v4  ;;  %p735_p10 = scmp.ne.s32.totalorder %s547_s30, %s734_s5  ;;  %p740_p12 = scmp.lt.s32.totalorder %s734_s5, %s734_s5 }
  0x24   :  { %601 = vmatpush3.msra.mxu0 %v52_v4 }
  0x25   :  { %602 = vmatprep.subr.mxu0 %v51_v5  ;;  %p741_p13 = por %p740_p12, %p739_p11 }
  0x26   :  { %603 = vmatpush3.msra.mxu0 %v51_v5 }
  0x27   :  { %605 = vmatmul.mubr.msk.f32.vlgmr.msra.gmra.mxu0 %vm61_vm1, %v48_v6  ;;  %624 = vmatprep.subr.bf16.mxu0 %v764_v9  ;;  %p742_p0 = pnand %p741_p13, %p735_p10 }
  0x28   :  { %607 = vmatprep.mubr.msk.f32.mxu0 %vm61_vm1, %v49_v7 }
  0x2b   :  { %608 = vmatmul.mubr.msk.f32.gmra.mxu0 %vm61_vm1, %v50_v8 }
  0x2c   :  { %628 = vmatprep.mubr.msk.bf16.mxu0 %vm765_vm2, %v764_v9 }
  0xe7   :  { %v809_v10 = vpop.f32.mrf.mxu0 }
  0xe9   :  { %v811_v11 = vpop.f32.mrf.mxu0 }
  0xea   :  { %v163_v15 = vpack.c.bf16 %v809_v10, %v811_v11 }
  0xeb   :  { %v813_v12 = vpop.f32.mrf.mxu0 }
  0xed   :  { %v815_v13 = vpop.f32.mrf.mxu0 }
  0xee   :  { %v164_v14 = vpack.c.bf16 %v813_v12, %v815_v13 }
  0xf0   :  { %611 = vmatpush3.bf16.msra.mxu1 %v164_v14 }
  0xf1   :  { %612 = vmatprep.subr.bf16.mxu1 %v764_v9 }
  0xf4   :  { %613 = vmatpush3.bf16.msra.mxu1 %v163_v15 }
  0xf7   :  { %615 = vmatmul.mubr.msk.bf16.vlgmr.msra.gmra.mxu1 %vm165_vm3, %v825_v16 }
  0xf8   :  { %620 = vmatprep.mubr.msk.bf16.mxu1 %vm240_vm5, %v658_v28 }
 0x1b7   :  { %v203_v18 = vpop.f32.mrf.mxu1 }
 0x1b8   :  { %v209_v19 = vadd.f32 1e-30, %v203_v18 }
 0x1b9   :  { %v616_v20 = vpop.f32.mrf.mxu1 }
 0x1ba   :  { %660 = vrcp.f32 %v209_v19 }
 0x1bb   :  { %v206_v21 = vpop.f32.mrf.mxu1 }
 0x1bd   :  { %v617_v22 = vpop.f32.mrf.mxu1 }
 0x1c7   :  { %v661_v23 = vpop.eup %660 }
 0x1c8   :  { %213 = vperm.xlu0 %656, %v661_v23  }
 0x243   :  { %v214_v24 = vpop.permute.xlu0 %213 }
 0x244   :  { %v216_v25 = vmul.f32 %v214_v24, %v203_v18 }
 0x246   :  { %v217_v26 = vmul.f32 %v216_v25, %v216_v25 }
 0x248   :  { %v219_v27 = vsel %vm218_vm4, %v217_v26, 0.0 }
 0x249   :  { %220 = vadd.xlane.f32.xlu0 %v219_v27 }
 0x2d2   :  { %v221_v29 = vpop.xlane.xlu0 %220 }
 0x2d3   :  { %v222_v30 = vadd.f32 1.0, %v221_v29  ;;  %v226_v31 = vadd.f32 1e-08, %v221_v29 }
 0x2d5   :  { %662 = vrcp.f32 %v222_v30 }
 0x2d6   :  { %664 = vrsqrt.f32 %v226_v31 }
 0x2e2   :  { %v663_v32 = vpop.eup %662 }
 0x2e3   :  { %v224_v33 = vmul.f32 %v663_v32, %v221_v29  ;;  %v665_v35 = vpop.eup %664 }
 0x2e5   :  { %v225_v34 = vmul.f32 %v224_v33, %v216_v25 }
 0x2e7   :  { %v228_v36 = vmul.f32 %v665_v35, %v225_v34 }
 0x2e9   :  { %v229_v37 = vpack.c.bf16 %v228_v36, %v228_v36 }
 0x2eb   :  { %646 = vmatprep.subr.msk.bf16.mxu1 %vm247_vm6, %v229_v37  ;;  %v249_v38 = vsel %vm247_vm6, %v229_v37, 0 }
 0x2ec   :  { %619 = vmatpush3.bf16.msra.mxu1 %v249_v38 }
 0x2ef   :  { %621 = vmatmul.mubr.msk.bf16.vlgmr.msra.gmra.mxu1 %vm240_vm5, %v839_v39 }
 0x2f0   :  { %634 = vmatprep.mubr.msk.bf16.mxu1 %vm240_vm5, %v658_v28 }
 0x3af   :  { %v622_v40 = vpop.f32.mrf.mxu1 }
 0x3b0   :  { %v302_v41 = vmul.f32 %v622_v40, %v815_v13 }
 0x3b1   :  { %v285_v42 = vpop.f32.mrf.mxu1 }
 0x3b2   :  { %v300_v43 = vmul.f32 %v285_v42, %v811_v11  ;;  %v310_v44 = vsel %vm165_vm3, %v302_v41, 0.0 }
 0x3b3   :  { %311 = vadd.xlane.f32.xlu1 %v310_v44  ;;  %v623_v45 = vpop.f32.mrf.mxu1 }
 0x3b4   :  { %v303_v46 = vmul.f32 %v623_v45, %v813_v12  ;;  %v304_v47 = vsel %vm165_vm3, %v300_v43, 0.0 }
 0x3b5   :  { %v288_v48 = vpop.f32.mrf.mxu1 }
 0x3b6   :  { %v301_v49 = vmul.f32 %v809_v10, %v288_v48  ;;  %v313_v50 = vsel %vm165_vm3, %v303_v46, 0.0 }
 0x3b7   :  { %305 = vadd.xlane.f32.xlu1 %v304_v47 }
 0x3b8   :  { %v307_v51 = vsel %vm165_vm3, %v301_v49, 0.0 }
 0x3bb   :  { %314 = vadd.xlane.f32.xlu1 %v313_v50 }
 0x3bf   :  { %308 = vadd.xlane.f32.xlu1 %v307_v51 }
 0x43c   :  { %v852_v52 = vpop.xlane.xlu1 %311 }
 0x43d   :  { %v324_v54 = vmul.f32 1.442695, %v852_v52 }
 0x43f   :  { %666 = vpow2.f32 %v324_v54 }
 0x440   :  { %v854_v53 = vpop.xlane.xlu1 %305 }
 0x441   :  { %v320_v56 = vmul.f32 1.442695, %v854_v53 }
 0x444   :  { %v857_v55 = vpop.xlane.xlu1 %314 }
 0x445   :  { %v326_v57 = vmul.f32 1.442695, %v857_v55 }
 0x447   :  { %668 = vpow2.f32 %v326_v57 }
 0x448   :  { %v861_v58 = vpop.xlane.xlu1 %308  ;;  %670 = vpow2.f32 %v320_v56 }
 0x449   :  { %v322_v59 = vmul.f32 1.442695, %v861_v58 }
 0x44b   :  { %672 = vpow2.f32 %v322_v59 }
 0x44c   :  { %v667_v60 = vpop.eup %666 }
 0x44d   :  { %v330_v62 = vmul.f32 %v667_v60, %v815_v13 }
 0x454   :  { %v669_v61 = vpop.eup %668 }
 0x455   :  { %v331_v63 = vmul.f32 %v669_v61, %v813_v12  ;;  %v671_v0 = vpop.eup %670 }
 0x456   :  { %v328_v3 = vmul.f32 %v671_v0, %v811_v11 }
 0x457   :  { %v333_v1 = vpack.c.bf16 %v331_v63, %v330_v62 }
 0x458   :  { %v673_v2 = vpop.eup %672 }
 0x459   :  { %625 = vmatpush3.bf16.msra.mxu0 %v333_v1  ;;  %v329_v4 = vmul.f32 %v673_v2, %v809_v10 }
 0x45a   :  { %626 = vmatprep.subr.bf16.mxu0 %v764_v9 }
 0x45b   :  { %v332_v5 = vpack.c.bf16 %v329_v4, %v328_v3 }
 0x45d   :  { %627 = vmatpush3.bf16.msra.mxu0 %v332_v5 }
 0x45e   :  { %638 = vmatprep.subr.bf16.mxu0 %v764_v9 }
 0x460   :  { %629 = vmatmul.mubr.msk.bf16.vlgmr.msra.gmra.mxu0 %vm165_vm3, %v825_v16 }
 0x461   :  { %642 = vmatprep.mubr.msk.bf16.mxu0 %vm765_vm2, %v764_v9 }
 0x520   :  { %v368_v6 = vpop.f32.mrf.mxu0 }
 0x521   :  { %v374_v7 = vadd.f32 1e-30, %v368_v6 }
 0x522   :  { %v630_v8 = vpop.f32.mrf.mxu0 }
 0x523   :  { %674 = vrcp.f32 %v374_v7 }
 0x524   :  { %v371_v14 = vpop.f32.mrf.mxu0 }
 0x526   :  { %v631_v15 = vpop.f32.mrf.mxu0 }
 0x530   :  { %v675_v17 = vpop.eup %674 }
 0x531   :  { %378 = vperm.xlu1 %657, %v675_v17  }
 0x5ac   :  { %v379_v18 = vpop.permute.xlu1 %378 }
 0x5ad   :  { %v381_v19 = vmul.f32 %v379_v18, %v368_v6 }
 0x5af   :  { %v382_v20 = vmul.f32 %v381_v19, %v381_v19 }
 0x5b1   :  { %v383_v21 = vsel %vm218_vm4, %v382_v20, 0.0 }
 0x5b2   :  { %384 = vadd.xlane.f32.xlu1 %v383_v21 }
 0x63b   :  { %v385_v22 = vpop.xlane.xlu1 %384 }
 0x63c   :  { %v386_v23 = vadd.f32 1.0, %v385_v22  ;;  %v390_v24 = vadd.f32 1e-08, %v385_v22 }
 0x63e   :  { %676 = vrcp.f32 %v386_v23 }
 0x63f   :  { %678 = vrsqrt.f32 %v390_v24 }
 0x64b   :  { %v677_v25 = vpop.eup %676 }
 0x64c   :  { %v388_v26 = vmul.f32 %v677_v25, %v385_v22  ;;  %v679_v28 = vpop.eup %678 }
 0x64e   :  { %v389_v27 = vmul.f32 %v388_v26, %v381_v19 }
 0x650   :  { %v392_v29 = vmul.f32 %v679_v28, %v389_v27 }
 0x652   :  { %v393_v30 = vpack.c.bf16 %v392_v29, %v392_v29 }
 0x654   :  { %647 = vmatprep.subr.msk.bf16.mxu1 %vm247_vm6, %v393_v30  ;;  %v395_v31 = vsel %vm247_vm6, %v393_v30, 0 }
 0x655   :  { %633 = vmatpush3.bf16.msra.mxu1 %v395_v31 }
 0x658   :  { %635 = vmatmul.mubr.msk.bf16.vlgmr.msra.gmra.mxu1 %vm240_vm5, %v839_v39 }
 0x718   :  { %v636_v32 = vpop.f32.mrf.mxu1 }
 0x719   :  { %v448_v33 = vmul.f32 %v636_v32, %v815_v13 }
 0x71a   :  { %v431_v34 = vpop.f32.mrf.mxu1 }
 0x71b   :  { %v446_v35 = vmul.f32 %v431_v34, %v811_v11  ;;  %v456_v36 = vsel %vm165_vm3, %v448_v33, 0.0 }
 0x71c   :  { %457 = vadd.xlane.f32.xlu0 %v456_v36  ;;  %v637_v37 = vpop.f32.mrf.mxu1 }
 0x71d   :  { %v449_v38 = vmul.f32 %v637_v37, %v813_v12  ;;  %v450_v40 = vsel %vm165_vm3, %v446_v35, 0.0 }
 0x71e   :  { %v434_v41 = vpop.f32.mrf.mxu1 }
 0x71f   :  { %v447_v42 = vmul.f32 %v809_v10, %v434_v41  ;;  %v459_v39 = vsel %vm165_vm3, %v449_v38, 0.0 }
 0x720   :  { %451 = vadd.xlane.f32.xlu0 %v450_v40 }
 0x721   :  { %v453_v43 = vsel %vm165_vm3, %v447_v42, 0.0 }
 0x724   :  { %460 = vadd.xlane.f32.xlu0 %v459_v39 }
 0x728   :  { %454 = vadd.xlane.f32.xlu0 %v453_v43 }
 0x7a5   :  { %v458_v44 = vpop.xlane.xlu0 %457 }
 0x7a6   :  { %v464_v45 = vadd.f32 %v458_v44, %v852_v52 }
 0x7a8   :  { %v470_v47 = vmul.f32 1.442695, %v464_v45 }
 0x7a9   :  { %v452_v46 = vpop.xlane.xlu0 %451 }
 0x7aa   :  { %v462_v48 = vadd.f32 %v452_v46, %v854_v53  ;;  %680 = vpow2.f32 %v470_v47 }
 0x7ac   :  { %v466_v51 = vmul.f32 1.442695, %v462_v48 }
 0x7ad   :  { %v461_v49 = vpop.xlane.xlu0 %460 }
 0x7ae   :  { %v465_v50 = vadd.f32 %v461_v49, %v857_v55 }
 0x7b0   :  { %v472_v54 = vmul.f32 1.442695, %v465_v50 }
 0x7b1   :  { %v455_v56 = vpop.xlane.xlu0 %454 }
 0x7b2   :  { %682 = vpow2.f32 %v472_v54  ;;  %v463_v57 = vadd.f32 %v455_v56, %v861_v58 }
 0x7b3   :  { %684 = vpow2.f32 %v466_v51 }
 0x7b4   :  { %v468_v59 = vmul.f32 1.442695, %v463_v57 }
 0x7b6   :  { %686 = vpow2.f32 %v468_v59 }
 0x7b7   :  { %v681_v60 = vpop.eup %680 }
 0x7b8   :  { %v476_v52 = vmul.f32 %v681_v60, %v815_v13 }
 0x7bf   :  { %v683_v61 = vpop.eup %682 }
 0x7c0   :  { %v477_v62 = vmul.f32 %v683_v61, %v813_v12  ;;  %v685_v53 = vpop.eup %684 }
 0x7c1   :  { %v474_v55 = vmul.f32 %v685_v53, %v811_v11 }
 0x7c2   :  { %v479_v63 = vpack.c.bf16 %v477_v62, %v476_v52 }
 0x7c3   :  { %v687_v0 = vpop.eup %686 }
 0x7c4   :  { %639 = vmatpush3.bf16.msra.mxu0 %v479_v63  ;;  %v475_v1 = vmul.f32 %v687_v0, %v809_v10 }
 0x7c5   :  { %640 = vmatprep.subr.bf16.mxu0 %v764_v9 }
 0x7c6   :  { %v478_v58 = vpack.c.bf16 %v475_v1, %v474_v55 }
 0x7c8   :  { %641 = vmatpush3.bf16.msra.mxu0 %v478_v58 }
 0x7cb   :  { %643 = vmatmul.mubr.msk.bf16.vlgmr.msra.gmra.mxu0 %vm165_vm3, %v825_v16 }
 0x88b   :  { %v514_v2 = vpop.f32.mrf.mxu0 }
 0x88c   :  { %v520_v3 = vadd.f32 1e-30, %v514_v2 }
 0x88d   :  { %v644_v13 = vpop.f32.mrf.mxu0 }
 0x88e   :  { %688 = vrcp.f32 %v520_v3 }
 0x88f   :  { %v517_v12 = vpop.f32.mrf.mxu0 }
 0x891   :  { %v645_v4 = vpop.f32.mrf.mxu0 }
 0x89b   :  { %v689_v5 = vpop.eup %688 }
 0x89c   :  { %524 = vperm.xlu0 %656, %v689_v5  }
 0x917   :  { %v525_v6 = vpop.permute.xlu0 %524 }
 0x918   :  { %v527_v7 = vmul.f32 %v525_v6, %v514_v2 }
 0x91a   :  { %v528_v11 = vmul.f32 %v527_v7, %v527_v7 }
 0x91c   :  { %v529_v10 = vsel %vm218_vm4, %v528_v11, 0.0 }
 0x91d   :  { %530 = vadd.xlane.f32.xlu1 %v529_v10 }
 0x9a6   :  { %v531_v9 = vpop.xlane.xlu1 %530 }
 0x9a7   :  { %v532_v8 = vadd.f32 1.0, %v531_v9  ;;  %v536_v14 = vadd.f32 1e-08, %v531_v9 }
 0x9a9   :  { %690 = vrcp.f32 %v532_v8 }
 0x9aa   :  { %692 = vrsqrt.f32 %v536_v14 }
 0x9b6   :  { %v691_v16 = vpop.eup %690 }
 0x9b7   :  { %v534_v15 = vmul.f32 %v691_v16, %v531_v9  ;;  %v693_v18 = vpop.eup %692 }
 0x9b9   :  { %v535_v17 = vmul.f32 %v534_v15, %v527_v7 }
 0x9bb   :  { %v538_v19 = vmul.f32 %v693_v18, %v535_v17 }
 0x9bd   :  { %539 = vst.msk [vmem:[#allocation7] sm:$0xf] %vm218_vm4, %v538_v19 }
 0x9be   :  { %745 = shalt.err (!%p742_p0)
}
 0x9bf   :  { %549 = dma.vmem_to_hbm [thread:$0]  %s547_s30, 64, %s907_s4, [#allocation4]  }
 0x9c0   :  { %758 = dma.done.wait [#allocation4], 64  }
 0x9c1   :  { %759 = vsyncadd [#allocation4], 4294967232 }
 0x9c2   :  { %553 = vsyncpa [#allocation3], 1 }
 0x9c3   :  { %554 = vsyncpa [#allocation6], 1 }
 0x9c4   :  { %555 = vsyncpa [#allocation4], 1 }

</bundles_post_ra>
